<compile_context>
chip_gen: v5e
topology: v5e:2x2
jax: 0.10.0
libtpu: 0.0.40
codegen_flags: <defaults>
</compile_context>

<pallas_src>
import functools

import jax
import jax.numpy as jnp
from jax.experimental import pallas as pl
from jax.experimental.pallas import tpu as pltpu


def _round_up(x, m):
    return (x + m - 1) // m * m


# ----------------------------------------------------------------------------
# Quantization glue (mirrors torchao _quantize with has_weight_zeros=True).
# ----------------------------------------------------------------------------
def quantize_weights(weights, group_size, nbit):
    qmin = -(1 << (nbit - 1))
    qmax = (1 << (nbit - 1)) - 1
    n, k = weights.shape
    v = weights.reshape(-1, group_size)
    vmins = jnp.min(v, axis=1)
    vmaxs = jnp.max(v, axis=1)
    scales = (vmaxs - vmins) / (qmax - qmin)
    # Guard against constant groups (scale == 0 -> NaN/inf); scale=1 round-trips
    # integer-valued constants.
    scales = jnp.where(scales > 0.0, scales, 1.0)
    zeros = qmin - jnp.round(vmins / scales)
    q = jnp.clip(jnp.round(v / scales[:, None]) + zeros[:, None], qmin, qmax)
    # int8 storage (nbit <= 8): 4x less memory than the int32 the module keeps.
    weight_qvals = q.reshape(n, k).astype(jnp.int8)
    weight_scales = scales.reshape(n, -1).astype(jnp.float32)
    weight_zeros = zeros.reshape(n, -1).astype(jnp.int32)
    return weight_qvals, weight_scales, weight_zeros


# ----------------------------------------------------------------------------
# Pallas kernel.
# ----------------------------------------------------------------------------
def _dequant_embedding_kernel(idx_smem, idx_ref, q_ref, side_ref, o_ref, *,
                              tb, group_size, n_groups):
    # idx_smem: (Bp,)    int32   flat ids (scalar-prefetched into SMEM)
    # idx_ref:  (TB, 1)  int32   ids for this grid step (VMEM block)
    # q_ref:    (N, K)   int8    full quantized table   (VMEM resident)
    # side_ref: (N, 2G)  float32 [scale | bias] table   (VMEM resident)
    # o_ref:    (TB, K)  float32 dequantized rows for this grid step
    n_rows = q_ref.shape[0]
    base = pl.program_id(0) * tb

    # --- Gather TB quantized rows with a one-hot matmul on the idle MXU. ---
    # Exact under any MXU precision mode (operands are 0/1 and small ints) and
    # bounds-safe (an out-of-range id selects nothing).  Only sensible for the
    # small-N VMEM-resident regime; see the DMA-gather TODO for large N.
    ids = idx_ref[...]                                              # (TB, 1)
    iota_n = jax.lax.broadcasted_iota(jnp.int32, (tb, n_rows), 1)   # (TB, N)
    onehot = (ids == iota_n).astype(jnp.float32)                    # (TB, N)
    q_tab = q_ref[...].astype(jnp.float32)                          # (N, K)
    q_rows = jnp.dot(onehot, q_tab, preferred_element_type=jnp.float32)

    # --- Gather the merged per-group (scale | bias) rows. ---
    # Arbitrary f32 values: keep them off the MXU so the gather is exact.
    # Each row is a single tiny (1, 2G) dynamic sublane slice.
    rows = []
    for t in range(tb):
        r = idx_smem[base + t]
        rows.append(side_ref[pl.ds(r, 1), :])
    side = jnp.concatenate(rows, axis=0)                            # (TB, 2G)

    # --- Expand per-group scale/bias across lanes (pure VPU broadcasts) and
    #     write the whole block with ONE dense (TB, K) store. ---
    s_full = jnp.concatenate(
        [jnp.broadcast_to(side[:, g:g + 1], (tb, group_size))
         for g in range(n_groups)], axis=-1)                        # (TB, K)
    b_full = jnp.concatenate(
        [jnp.broadcast_to(side[:, n_groups + g:n_groups + g + 1],
                          (tb, group_size))
         for g in range(n_groups)], axis=-1)                        # (TB, K)
    o_ref[...] = q_rows * s_full + b_full


# ----------------------------------------------------------------------------
# Wrapper.
# ----------------------------------------------------------------------------
def quantized_embedding_lookup(indices, weight_qvals, weight_scales,
                               weight_zeros, group_size, *, tb=64):
    """indices: int32 array of arbitrary shape.
    Returns float32 array of shape (*indices.shape, embedding_dim).

    Note: PyTorch raises on out-of-range ids; here ids are clamped to
    [0, N-1] for memory safety (Pallas does not bounds-check VMEM refs).
    """
    orig_shape = indices.shape
    N, K = weight_qvals.shape
    G = K // group_size
    assert G * group_size == K

    flat = indices.reshape(-1).astype(jnp.int32)
    flat = jnp.clip(flat, 0, N - 1)
    B = flat.shape[0]

    # Big output blocks (dense, lane-aligned stores); tb adapts down so that it
    # divides the (padded) batch for small inputs.
    tb = max(8, min(tb, _round_up(B, 8)))
    Bp = _round_up(B, tb)
    if Bp != B:
        flat = jnp.pad(flat, (0, Bp - B))   # pad with row 0; discarded below
    idx2d = flat.reshape(Bp, 1)
    n_steps = Bp // tb

    qvals = weight_qvals.astype(jnp.int8)
    scales = weight_scales.astype(jnp.float32)
    bias = -weight_zeros.astype(jnp.float32) * scales
    side = jnp.concatenate([scales, bias], axis=1)        # (N, 2G) scale|bias

    kernel = functools.partial(_dequant_embedding_kernel, tb=tb,
                               group_size=group_size, n_groups=G)

    # VMEM budget: resident tables (+ the f32 temp of the int8 cast) +
    # double-buffered idx/out blocks, clamped below physical per-core VMEM.
    try:
        phys = int(getattr(pltpu.get_tpu_info(), "vmem_capacity_bytes",
                           64 * 2**20))
    except Exception:
        phys = 64 * 2**20   # smallest per-core VMEM across v5e/v6e/v7x
    q_bytes = _round_up(N, 32) * _round_up(K, 128)               # int8
    q_f32_tmp = _round_up(N, 8) * _round_up(K, 128) * 4
    side_bytes = _round_up(N, 8) * _round_up(2 * G, 128) * 4
    io_bytes = 2 * tb * 128 * 4 + 2 * tb * _round_up(K, 128) * 4

    def build(single_buffer_tables):
        def table_spec(shape):
            kwargs = {}
            if single_buffer_tables:
                # Constant index_map -> one buffer suffices; halves the
                # resident footprint (most valuable on v7x's 64 MiB VMEM).
                kwargs["pipeline_mode"] = pl.Buffered(1)
            return pl.BlockSpec(shape, lambda i, idx: (0, 0), **kwargs)

        tbl_mult = 1 if single_buffer_tables else 2
        need = (tbl_mult * (q_bytes + side_bytes) + q_f32_tmp + io_bytes
                + (8 << 20))
        vmem_limit = int(min(max(need, 32 << 20), phys - (4 << 20)))

        grid_spec = pltpu.PrefetchScalarGridSpec(
            num_scalar_prefetch=1,
            grid=(n_steps,),
            in_specs=[
                pl.BlockSpec((tb, 1), lambda i, idx: (i, 0)),   # ids (VMEM)
                table_spec((N, K)),                             # int8 qvals
                table_spec((N, 2 * G)),                         # scale|bias
            ],
            out_specs=pl.BlockSpec((tb, K), lambda i, idx: (i, 0)),
        )
        return pl.pallas_call(
            kernel,
            out_shape=jax.ShapeDtypeStruct((Bp, K), jnp.float32),
            grid_spec=grid_spec,
            compiler_params=pltpu.CompilerParams(
                dimension_semantics=("parallel",),
                vmem_limit_bytes=vmem_limit,
            ),
        )

    try:
        out = jax.block_until_ready(build(True)(flat, idx2d, qvals, side))
    except Exception:
        # pipeline_mode=pl.Buffered(1) unsupported on this jax build: fall back
        # to default double-buffered resident tables (functionally identical).
        out = build(False)(flat, idx2d, qvals, side)

    return out[:B].reshape(*orig_shape, K)


# ----------------------------------------------------------------------------
# Reference (pure JAX) for verification.
# ----------------------------------------------------------------------------
def reference_lookup(indices, weight_qvals, weight_scales, weight_zeros,
                     group_size):
    q = weight_qvals[indices].astype(jnp.float32)              # (..., K)
    s = jnp.repeat(weight_scales[indices], group_size, -1)     # (..., K)
    z = jnp.repeat(weight_zeros[indices].astype(jnp.float32), group_size, -1)
    return (q - z) * s


if __name__ == "__main__":
    key = jax.random.PRNGKey(0)
    k_w, k_x = jax.random.split(key)

    nbit = 4
    num_embeddings = 32
    embedding_dim = 256
    group_size = 128

    weights = jax.random.normal(k_w, (num_embeddings, embedding_dim),
                                dtype=jnp.float32)
    weight_qvals, weight_scales, weight_zeros = quantize_weights(
        weights, group_size, nbit)

    # Indices: small 2-D batch of token ids (forward accepts any shape).
    x = jax.random.randint(k_x, (2, 8), 0, num_embeddings, dtype=jnp.int32)

    out = quantized_embedding_lookup(x, weight_qvals, weight_scales,
                                     weight_zeros, group_size)
    out = jax.block_until_ready(out)

    ref = reference_lookup(x, weight_qvals, weight_scales, weight_zeros,
                           group_size)
    assert out.shape == (*x.shape, embedding_dim)
    assert out.dtype == jnp.float32
    assert jnp.allclose(out, ref, atol=1e-5, rtol=1e-5), \
        float(jnp.max(jnp.abs(out - ref)))

    print("KERNEL_OK")
</pallas_src>

<mosaic_0001>
module attributes {stable_mosaic.version = 11 : i64} {
  func.func @_dequant_embedding_kernel(%arg0: i32, %arg1: memref<16xi32, #tpu.memory_space<smem>>, %arg2: memref<16x1xi32, #tpu.memory_space<vmem>>, %arg3: memref<32x256xi8, #tpu.memory_space<vmem>>, %arg4: memref<32x4xf32, #tpu.memory_space<vmem>>, %arg5: memref<16x256xf32, #tpu.memory_space<vmem>>) attributes {dimension_semantics = [#tpu.dimension_semantics<parallel>], iteration_bounds = array<i64: 1>, scalar_prefetch = 1 : i64, scratch_operands = 0 : i64, tpu.core_type = #tpu.core_type<tc>, window_params = [{transform_indices = @transform_0, window_bounds = array<i64: 16, 1>}, {pipeline_mode = #tpu.pipeline_mode<synchronous>, transform_indices = @transform_1, window_bounds = array<i64: 32, 256>}, {pipeline_mode = #tpu.pipeline_mode<synchronous>, transform_indices = @transform_2, window_bounds = array<i64: 32, 4>}, {transform_indices = @transform_3, window_bounds = array<i64: 16, 256>}]} {
    %c16_i32 = arith.constant 16 : i32
    %0 = arith.muli %arg0, %c16_i32 : i32
    %c0 = arith.constant 0 : index
    %c0_0 = arith.constant 0 : index
    %1 = vector.load %arg2[%c0, %c0_0] : memref<16x1xi32, #tpu.memory_space<vmem>>, vector<16x1xi32>
    %2 = tpu.iota {dimensions = array<i32: 1>} : vector<16x32xi32>
    %3 = vector.broadcast %1 : vector<16x1xi32> to vector<16x32xi32>
    %4 = arith.cmpi eq, %3, %2 : vector<16x32xi32>
    %5 = arith.extui %4 : vector<16x32xi1> to vector<16x32xi32>
    %6 = arith.sitofp %5 : vector<16x32xi32> to vector<16x32xf32>
    %c0_1 = arith.constant 0 : index
    %c0_2 = arith.constant 0 : index
    %7 = vector.load %arg3[%c0_1, %c0_2] : memref<32x256xi8, #tpu.memory_space<vmem>>, vector<32x256xi8>
    %8 = arith.sitofp %7 : vector<32x256xi8> to vector<32x256xf32>
    %cst = arith.constant dense<0.000000e+00> : vector<16x256xf32>
    %9 = tpu.matmul %6, %8, %cst {dimension_numbers = #tpu.dot_dimension_numbers<[1], [0], [0], [1], [0, 0, 1, 1], [], []>} : vector<16x32xf32>, vector<32x256xf32>, vector<16x256xf32> -> vector<16x256xf32>
    %c0_i32 = arith.constant 0 : i32
    %10 = arith.addi %0, %c0_i32 : i32
    %11 = arith.index_cast %10 : i32 to index
    %12 = memref.load %arg1[%11] : memref<16xi32, #tpu.memory_space<smem>>
    %13 = arith.index_cast %12 : i32 to index
    %c0_3 = arith.constant 0 : index
    %14 = vector.load %arg4[%13, %c0_3] : memref<32x4xf32, #tpu.memory_space<vmem>>, vector<1x4xf32>
    %c1_i32 = arith.constant 1 : i32
    %15 = arith.addi %0, %c1_i32 : i32
    %16 = arith.index_cast %15 : i32 to index
    %17 = memref.load %arg1[%16] : memref<16xi32, #tpu.memory_space<smem>>
    %18 = arith.index_cast %17 : i32 to index
    %c0_4 = arith.constant 0 : index
    %19 = vector.load %arg4[%18, %c0_4] : memref<32x4xf32, #tpu.memory_space<vmem>>, vector<1x4xf32>
    %c2_i32 = arith.constant 2 : i32
    %20 = arith.addi %0, %c2_i32 : i32
    %21 = arith.index_cast %20 : i32 to index
    %22 = memref.load %arg1[%21] : memref<16xi32, #tpu.memory_space<smem>>
    %23 = arith.index_cast %22 : i32 to index
    %c0_5 = arith.constant 0 : index
    %24 = vector.load %arg4[%23, %c0_5] : memref<32x4xf32, #tpu.memory_space<vmem>>, vector<1x4xf32>
    %c3_i32 = arith.constant 3 : i32
    %25 = arith.addi %0, %c3_i32 : i32
    %26 = arith.index_cast %25 : i32 to index
    %27 = memref.load %arg1[%26] : memref<16xi32, #tpu.memory_space<smem>>
    %28 = arith.index_cast %27 : i32 to index
    %c0_6 = arith.constant 0 : index
    %29 = vector.load %arg4[%28, %c0_6] : memref<32x4xf32, #tpu.memory_space<vmem>>, vector<1x4xf32>
    %c4_i32 = arith.constant 4 : i32
    %30 = arith.addi %0, %c4_i32 : i32
    %31 = arith.index_cast %30 : i32 to index
    %32 = memref.load %arg1[%31] : memref<16xi32, #tpu.memory_space<smem>>
    %33 = arith.index_cast %32 : i32 to index
    %c0_7 = arith.constant 0 : index
    %34 = vector.load %arg4[%33, %c0_7] : memref<32x4xf32, #tpu.memory_space<vmem>>, vector<1x4xf32>
    %c5_i32 = arith.constant 5 : i32
    %35 = arith.addi %0, %c5_i32 : i32
    %36 = arith.index_cast %35 : i32 to index
    %37 = memref.load %arg1[%36] : memref<16xi32, #tpu.memory_space<smem>>
    %38 = arith.index_cast %37 : i32 to index
    %c0_8 = arith.constant 0 : index
    %39 = vector.load %arg4[%38, %c0_8] : memref<32x4xf32, #tpu.memory_space<vmem>>, vector<1x4xf32>
    %c6_i32 = arith.constant 6 : i32
    %40 = arith.addi %0, %c6_i32 : i32
    %41 = arith.index_cast %40 : i32 to index
    %42 = memref.load %arg1[%41] : memref<16xi32, #tpu.memory_space<smem>>
    %43 = arith.index_cast %42 : i32 to index
    %c0_9 = arith.constant 0 : index
    %44 = vector.load %arg4[%43, %c0_9] : memref<32x4xf32, #tpu.memory_space<vmem>>, vector<1x4xf32>
    %c7_i32 = arith.constant 7 : i32
    %45 = arith.addi %0, %c7_i32 : i32
    %46 = arith.index_cast %45 : i32 to index
    %47 = memref.load %arg1[%46] : memref<16xi32, #tpu.memory_space<smem>>
    %48 = arith.index_cast %47 : i32 to index
    %c0_10 = arith.constant 0 : index
    %49 = vector.load %arg4[%48, %c0_10] : memref<32x4xf32, #tpu.memory_space<vmem>>, vector<1x4xf32>
    %c8_i32 = arith.constant 8 : i32
    %50 = arith.addi %0, %c8_i32 : i32
    %51 = arith.index_cast %50 : i32 to index
    %52 = memref.load %arg1[%51] : memref<16xi32, #tpu.memory_space<smem>>
    %53 = arith.index_cast %52 : i32 to index
    %c0_11 = arith.constant 0 : index
    %54 = vector.load %arg4[%53, %c0_11] : memref<32x4xf32, #tpu.memory_space<vmem>>, vector<1x4xf32>
    %c9_i32 = arith.constant 9 : i32
    %55 = arith.addi %0, %c9_i32 : i32
    %56 = arith.index_cast %55 : i32 to index
    %57 = memref.load %arg1[%56] : memref<16xi32, #tpu.memory_space<smem>>
    %58 = arith.index_cast %57 : i32 to index
    %c0_12 = arith.constant 0 : index
    %59 = vector.load %arg4[%58, %c0_12] : memref<32x4xf32, #tpu.memory_space<vmem>>, vector<1x4xf32>
    %c10_i32 = arith.constant 10 : i32
    %60 = arith.addi %0, %c10_i32 : i32
    %61 = arith.index_cast %60 : i32 to index
    %62 = memref.load %arg1[%61] : memref<16xi32, #tpu.memory_space<smem>>
    %63 = arith.index_cast %62 : i32 to index
    %c0_13 = arith.constant 0 : index
    %64 = vector.load %arg4[%63, %c0_13] : memref<32x4xf32, #tpu.memory_space<vmem>>, vector<1x4xf32>
    %c11_i32 = arith.constant 11 : i32
    %65 = arith.addi %0, %c11_i32 : i32
    %66 = arith.index_cast %65 : i32 to index
    %67 = memref.load %arg1[%66] : memref<16xi32, #tpu.memory_space<smem>>
    %68 = arith.index_cast %67 : i32 to index
    %c0_14 = arith.constant 0 : index
    %69 = vector.load %arg4[%68, %c0_14] : memref<32x4xf32, #tpu.memory_space<vmem>>, vector<1x4xf32>
    %c12_i32 = arith.constant 12 : i32
    %70 = arith.addi %0, %c12_i32 : i32
    %71 = arith.index_cast %70 : i32 to index
    %72 = memref.load %arg1[%71] : memref<16xi32, #tpu.memory_space<smem>>
    %73 = arith.index_cast %72 : i32 to index
    %c0_15 = arith.constant 0 : index
    %74 = vector.load %arg4[%73, %c0_15] : memref<32x4xf32, #tpu.memory_space<vmem>>, vector<1x4xf32>
    %c13_i32 = arith.constant 13 : i32
    %75 = arith.addi %0, %c13_i32 : i32
    %76 = arith.index_cast %75 : i32 to index
    %77 = memref.load %arg1[%76] : memref<16xi32, #tpu.memory_space<smem>>
    %78 = arith.index_cast %77 : i32 to index
    %c0_16 = arith.constant 0 : index
    %79 = vector.load %arg4[%78, %c0_16] : memref<32x4xf32, #tpu.memory_space<vmem>>, vector<1x4xf32>
    %c14_i32 = arith.constant 14 : i32
    %80 = arith.addi %0, %c14_i32 : i32
    %81 = arith.index_cast %80 : i32 to index
    %82 = memref.load %arg1[%81] : memref<16xi32, #tpu.memory_space<smem>>
    %83 = arith.index_cast %82 : i32 to index
    %c0_17 = arith.constant 0 : index
    %84 = vector.load %arg4[%83, %c0_17] : memref<32x4xf32, #tpu.memory_space<vmem>>, vector<1x4xf32>
    %c15_i32 = arith.constant 15 : i32
    %85 = arith.addi %0, %c15_i32 : i32
    %86 = arith.index_cast %85 : i32 to index
    %87 = memref.load %arg1[%86] : memref<16xi32, #tpu.memory_space<smem>>
    %88 = arith.index_cast %87 : i32 to index
    %c0_18 = arith.constant 0 : index
    %89 = vector.load %arg4[%88, %c0_18] : memref<32x4xf32, #tpu.memory_space<vmem>>, vector<1x4xf32>
    %90 = tpu.concatenate %14, %19, %24, %29, %34, %39, %44, %49, %54, %59, %64, %69, %74, %79, %84, %89 in 0 : vector<1x4xf32>, vector<1x4xf32>, vector<1x4xf32>, vector<1x4xf32>, vector<1x4xf32>, vector<1x4xf32>, vector<1x4xf32>, vector<1x4xf32>, vector<1x4xf32>, vector<1x4xf32>, vector<1x4xf32>, vector<1x4xf32>, vector<1x4xf32>, vector<1x4xf32>, vector<1x4xf32>, vector<1x4xf32> -> vector<16x4xf32>
    %91 = vector.extract_strided_slice %90 {offsets = [0, 0], sizes = [16, 1], strides = [1, 1]} : vector<16x4xf32> to vector<16x1xf32>
    %92 = vector.shape_cast %91 : vector<16x1xf32> to vector<16x1xf32>
    %93 = vector.broadcast %92 : vector<16x1xf32> to vector<16x128xf32>
    %94 = vector.extract_strided_slice %90 {offsets = [0, 1], sizes = [16, 1], strides = [1, 1]} : vector<16x4xf32> to vector<16x1xf32>
    %95 = vector.shape_cast %94 : vector<16x1xf32> to vector<16x1xf32>
    %96 = vector.broadcast %95 : vector<16x1xf32> to vector<16x128xf32>
    %97 = tpu.concatenate %93, %96 in 1 : vector<16x128xf32>, vector<16x128xf32> -> vector<16x256xf32>
    %98 = vector.extract_strided_slice %90 {offsets = [0, 2], sizes = [16, 1], strides = [1, 1]} : vector<16x4xf32> to vector<16x1xf32>
    %99 = vector.shape_cast %98 : vector<16x1xf32> to vector<16x1xf32>
    %100 = vector.broadcast %99 : vector<16x1xf32> to vector<16x128xf32>
    %101 = vector.extract_strided_slice %90 {offsets = [0, 3], sizes = [16, 1], strides = [1, 1]} : vector<16x4xf32> to vector<16x1xf32>
    %102 = vector.shape_cast %101 : vector<16x1xf32> to vector<16x1xf32>
    %103 = vector.broadcast %102 : vector<16x1xf32> to vector<16x128xf32>
    %104 = tpu.concatenate %100, %103 in 1 : vector<16x128xf32>, vector<16x128xf32> -> vector<16x256xf32>
    %105 = arith.mulf %9, %97 : vector<16x256xf32>
    %106 = arith.addf %105, %104 : vector<16x256xf32>
    %c0_19 = arith.constant 0 : index
    %c0_20 = arith.constant 0 : index
    %107 = vector.load %arg5[%c0_19, %c0_20] : memref<16x256xf32, #tpu.memory_space<vmem>>, vector<16x256xf32>
    tpu.vector_store %arg5[%c0_19, %c0_20], %106 {strides = array<i32>} : memref<16x256xf32, #tpu.memory_space<vmem>>, vector<16x256xf32>,
    return
  }
  func.func @transform_0(%arg0: i32, %arg1: memref<16xi32, #tpu.memory_space<smem>>) -> (i32, i32) {
    %c0_i32 = arith.constant 0 : i32
    %c0_i32_0 = arith.constant 0 : i32
    return %arg0, %c0_i32 : i32, i32
  }
  func.func @transform_1(%arg0: i32, %arg1: memref<16xi32, #tpu.memory_space<smem>>) -> (i32, i32) {
    %c0_i32 = arith.constant 0 : i32
    %c0_i32_0 = arith.constant 0 : i32
    %c0_i32_1 = arith.constant 0 : i32
    return %c0_i32, %c0_i32_0 : i32, i32
  }
  func.func @transform_2(%arg0: i32, %arg1: memref<16xi32, #tpu.memory_space<smem>>) -> (i32, i32) {
    %c0_i32 = arith.constant 0 : i32
    %c0_i32_0 = arith.constant 0 : i32
    %c0_i32_1 = arith.constant 0 : i32
    return %c0_i32, %c0_i32_0 : i32, i32
  }
  func.func @transform_3(%arg0: i32, %arg1: memref<16xi32, #tpu.memory_space<smem>>) -> (i32, i32) {
    %c0_i32 = arith.constant 0 : i32
    %c0_i32_0 = arith.constant 0 : i32
    return %arg0, %c0_i32 : i32, i32
  }
}

module attributes {stable_mosaic.version = 11 : i64} {
  func.func @_dequant_embedding_kernel(%arg0: i32, %arg1: memref<16xi32, #tpu.memory_space<smem>>, %arg2: memref<16x1xi32, #tpu.memory_space<vmem>>, %arg3: memref<32x256xi8, #tpu.memory_space<vmem>>, %arg4: memref<32x4xf32, #tpu.memory_space<vmem>>, %arg5: memref<16x256xf32, #tpu.memory_space<vmem>>) attributes {dimension_semantics = [#tpu.dimension_semantics<parallel>], iteration_bounds = array<i64: 1>, scalar_prefetch = 1 : i64, scratch_operands = 0 : i64, tpu.core_type = #tpu.core_type<tc>, window_params = [{transform_indices = @transform_0, window_bounds = array<i64: 16, 1>}, {pipeline_mode = #tpu.pipeline_mode<synchronous>, transform_indices = @transform_1, window_bounds = array<i64: 32, 256>}, {pipeline_mode = #tpu.pipeline_mode<synchronous>, transform_indices = @transform_2, window_bounds = array<i64: 32, 4>}, {transform_indices = @transform_3, window_bounds = array<i64: 16, 256>}]} {
    %c16_i32 = arith.constant 16 : i32
    %0 = arith.muli %arg0, %c16_i32 : i32
    %c0 = arith.constant 0 : index
    %c0_0 = arith.constant 0 : index
    %1 = vector.load %arg2[%c0, %c0_0] : memref<16x1xi32, #tpu.memory_space<vmem>>, vector<16x1xi32>
    %2 = tpu.iota {dimensions = array<i32: 1>} : vector<16x32xi32>
    %3 = vector.broadcast %1 : vector<16x1xi32> to vector<16x32xi32>
    %4 = arith.cmpi eq, %3, %2 : vector<16x32xi32>
    %5 = arith.extui %4 : vector<16x32xi1> to vector<16x32xi32>
    %6 = arith.sitofp %5 : vector<16x32xi32> to vector<16x32xf32>
    %c0_1 = arith.constant 0 : index
    %c0_2 = arith.constant 0 : index
    %7 = vector.load %arg3[%c0_1, %c0_2] : memref<32x256xi8, #tpu.memory_space<vmem>>, vector<32x256xi8>
    %8 = arith.sitofp %7 : vector<32x256xi8> to vector<32x256xf32>
    %cst = arith.constant dense<0.000000e+00> : vector<16x256xf32>
    %9 = tpu.matmul %6, %8, %cst {dimension_numbers = #tpu.dot_dimension_numbers<[1], [0], [0], [1], [0, 0, 1, 1], [], []>} : vector<16x32xf32>, vector<32x256xf32>, vector<16x256xf32> -> vector<16x256xf32>
    %c0_i32 = arith.constant 0 : i32
    %10 = arith.addi %0, %c0_i32 : i32
    %11 = arith.index_cast %10 : i32 to index
    %12 = memref.load %arg1[%11] : memref<16xi32, #tpu.memory_space<smem>>
    %13 = arith.index_cast %12 : i32 to index
    %c0_3 = arith.constant 0 : index
    %14 = vector.load %arg4[%13, %c0_3] : memref<32x4xf32, #tpu.memory_space<vmem>>, vector<1x4xf32>
    %c1_i32 = arith.constant 1 : i32
    %15 = arith.addi %0, %c1_i32 : i32
    %16 = arith.index_cast %15 : i32 to index
    %17 = memref.load %arg1[%16] : memref<16xi32, #tpu.memory_space<smem>>
    %18 = arith.index_cast %17 : i32 to index
    %c0_4 = arith.constant 0 : index
    %19 = vector.load %arg4[%18, %c0_4] : memref<32x4xf32, #tpu.memory_space<vmem>>, vector<1x4xf32>
    %c2_i32 = arith.constant 2 : i32
    %20 = arith.addi %0, %c2_i32 : i32
    %21 = arith.index_cast %20 : i32 to index
    %22 = memref.load %arg1[%21] : memref<16xi32, #tpu.memory_space<smem>>
    %23 = arith.index_cast %22 : i32 to index
    %c0_5 = arith.constant 0 : index
    %24 = vector.load %arg4[%23, %c0_5] : memref<32x4xf32, #tpu.memory_space<vmem>>, vector<1x4xf32>
    %c3_i32 = arith.constant 3 : i32
    %25 = arith.addi %0, %c3_i32 : i32
    %26 = arith.index_cast %25 : i32 to index
    %27 = memref.load %arg1[%26] : memref<16xi32, #tpu.memory_space<smem>>
    %28 = arith.index_cast %27 : i32 to index
    %c0_6 = arith.constant 0 : index
    %29 = vector.load %arg4[%28, %c0_6] : memref<32x4xf32, #tpu.memory_space<vmem>>, vector<1x4xf32>
    %c4_i32 = arith.constant 4 : i32
    %30 = arith.addi %0, %c4_i32 : i32
    %31 = arith.index_cast %30 : i32 to index
    %32 = memref.load %arg1[%31] : memref<16xi32, #tpu.memory_space<smem>>
    %33 = arith.index_cast %32 : i32 to index
    %c0_7 = arith.constant 0 : index
    %34 = vector.load %arg4[%33, %c0_7] : memref<32x4xf32, #tpu.memory_space<vmem>>, vector<1x4xf32>
    %c5_i32 = arith.constant 5 : i32
    %35 = arith.addi %0, %c5_i32 : i32
    %36 = arith.index_cast %35 : i32 to index
    %37 = memref.load %arg1[%36] : memref<16xi32, #tpu.memory_space<smem>>
    %38 = arith.index_cast %37 : i32 to index
    %c0_8 = arith.constant 0 : index
    %39 = vector.load %arg4[%38, %c0_8] : memref<32x4xf32, #tpu.memory_space<vmem>>, vector<1x4xf32>
    %c6_i32 = arith.constant 6 : i32
    %40 = arith.addi %0, %c6_i32 : i32
    %41 = arith.index_cast %40 : i32 to index
    %42 = memref.load %arg1[%41] : memref<16xi32, #tpu.memory_space<smem>>
    %43 = arith.index_cast %42 : i32 to index
    %c0_9 = arith.constant 0 : index
    %44 = vector.load %arg4[%43, %c0_9] : memref<32x4xf32, #tpu.memory_space<vmem>>, vector<1x4xf32>
    %c7_i32 = arith.constant 7 : i32
    %45 = arith.addi %0, %c7_i32 : i32
    %46 = arith.index_cast %45 : i32 to index
    %47 = memref.load %arg1[%46] : memref<16xi32, #tpu.memory_space<smem>>
    %48 = arith.index_cast %47 : i32 to index
    %c0_10 = arith.constant 0 : index
    %49 = vector.load %arg4[%48, %c0_10] : memref<32x4xf32, #tpu.memory_space<vmem>>, vector<1x4xf32>
    %c8_i32 = arith.constant 8 : i32
    %50 = arith.addi %0, %c8_i32 : i32
    %51 = arith.index_cast %50 : i32 to index
    %52 = memref.load %arg1[%51] : memref<16xi32, #tpu.memory_space<smem>>
    %53 = arith.index_cast %52 : i32 to index
    %c0_11 = arith.constant 0 : index
    %54 = vector.load %arg4[%53, %c0_11] : memref<32x4xf32, #tpu.memory_space<vmem>>, vector<1x4xf32>
    %c9_i32 = arith.constant 9 : i32
    %55 = arith.addi %0, %c9_i32 : i32
    %56 = arith.index_cast %55 : i32 to index
    %57 = memref.load %arg1[%56] : memref<16xi32, #tpu.memory_space<smem>>
    %58 = arith.index_cast %57 : i32 to index
    %c0_12 = arith.constant 0 : index
    %59 = vector.load %arg4[%58, %c0_12] : memref<32x4xf32, #tpu.memory_space<vmem>>, vector<1x4xf32>
    %c10_i32 = arith.constant 10 : i32
    %60 = arith.addi %0, %c10_i32 : i32
    %61 = arith.index_cast %60 : i32 to index
    %62 = memref.load %arg1[%61] : memref<16xi32, #tpu.memory_space<smem>>
    %63 = arith.index_cast %62 : i32 to index
    %c0_13 = arith.constant 0 : index
    %64 = vector.load %arg4[%63, %c0_13] : memref<32x4xf32, #tpu.memory_space<vmem>>, vector<1x4xf32>
    %c11_i32 = arith.constant 11 : i32
    %65 = arith.addi %0, %c11_i32 : i32
    %66 = arith.index_cast %65 : i32 to index
    %67 = memref.load %arg1[%66] : memref<16xi32, #tpu.memory_space<smem>>
    %68 = arith.index_cast %67 : i32 to index
    %c0_14 = arith.constant 0 : index
    %69 = vector.load %arg4[%68, %c0_14] : memref<32x4xf32, #tpu.memory_space<vmem>>, vector<1x4xf32>
    %c12_i32 = arith.constant 12 : i32
    %70 = arith.addi %0, %c12_i32 : i32
    %71 = arith.index_cast %70 : i32 to index
    %72 = memref.load %arg1[%71] : memref<16xi32, #tpu.memory_space<smem>>
    %73 = arith.index_cast %72 : i32 to index
    %c0_15 = arith.constant 0 : index
    %74 = vector.load %arg4[%73, %c0_15] : memref<32x4xf32, #tpu.memory_space<vmem>>, vector<1x4xf32>
    %c13_i32 = arith.constant 13 : i32
    %75 = arith.addi %0, %c13_i32 : i32
    %76 = arith.index_cast %75 : i32 to index
    %77 = memref.load %arg1[%76] : memref<16xi32, #tpu.memory_space<smem>>
    %78 = arith.index_cast %77 : i32 to index
    %c0_16 = arith.constant 0 : index
    %79 = vector.load %arg4[%78, %c0_16] : memref<32x4xf32, #tpu.memory_space<vmem>>, vector<1x4xf32>
    %c14_i32 = arith.constant 14 : i32
    %80 = arith.addi %0, %c14_i32 : i32
    %81 = arith.index_cast %80 : i32 to index
    %82 = memref.load %arg1[%81] : memref<16xi32, #tpu.memory_space<smem>>
    %83 = arith.index_cast %82 : i32 to index
    %c0_17 = arith.constant 0 : index
    %84 = vector.load %arg4[%83, %c0_17] : memref<32x4xf32, #tpu.memory_space<vmem>>, vector<1x4xf32>
    %c15_i32 = arith.constant 15 : i32
    %85 = arith.addi %0, %c15_i32 : i32
    %86 = arith.index_cast %85 : i32 to index
    %87 = memref.load %arg1[%86] : memref<16xi32, #tpu.memory_space<smem>>
    %88 = arith.index_cast %87 : i32 to index
    %c0_18 = arith.constant 0 : index
    %89 = vector.load %arg4[%88, %c0_18] : memref<32x4xf32, #tpu.memory_space<vmem>>, vector<1x4xf32>
    %90 = tpu.concatenate %14, %19, %24, %29, %34, %39, %44, %49, %54, %59, %64, %69, %74, %79, %84, %89 in 0 : vector<1x4xf32>, vector<1x4xf32>, vector<1x4xf32>, vector<1x4xf32>, vector<1x4xf32>, vector<1x4xf32>, vector<1x4xf32>, vector<1x4xf32>, vector<1x4xf32>, vector<1x4xf32>, vector<1x4xf32>, vector<1x4xf32>, vector<1x4xf32>, vector<1x4xf32>, vector<1x4xf32>, vector<1x4xf32> -> vector<16x4xf32>
    %91 = vector.extract_strided_slice %90 {offsets = [0, 0], sizes = [16, 1], strides = [1, 1]} : vector<16x4xf32> to vector<16x1xf32>
    %92 = vector.shape_cast %91 : vector<16x1xf32> to vector<16x1xf32>
    %93 = vector.broadcast %92 : vector<16x1xf32> to vector<16x128xf32>
    %94 = vector.extract_strided_slice %90 {offsets = [0, 1], sizes = [16, 1], strides = [1, 1]} : vector<16x4xf32> to vector<16x1xf32>
    %95 = vector.shape_cast %94 : vector<16x1xf32> to vector<16x1xf32>
    %96 = vector.broadcast %95 : vector<16x1xf32> to vector<16x128xf32>
    %97 = tpu.concatenate %93, %96 in 1 : vector<16x128xf32>, vector<16x128xf32> -> vector<16x256xf32>
    %98 = vector.extract_strided_slice %90 {offsets = [0, 2], sizes = [16, 1], strides = [1, 1]} : vector<16x4xf32> to vector<16x1xf32>
    %99 = vector.shape_cast %98 : vector<16x1xf32> to vector<16x1xf32>
    %100 = vector.broadcast %99 : vector<16x1xf32> to vector<16x128xf32>
    %101 = vector.extract_strided_slice %90 {offsets = [0, 3], sizes = [16, 1], strides = [1, 1]} : vector<16x4xf32> to vector<16x1xf32>
    %102 = vector.shape_cast %101 : vector<16x1xf32> to vector<16x1xf32>
    %103 = vector.broadcast %102 : vector<16x1xf32> to vector<16x128xf32>
    %104 = tpu.concatenate %100, %103 in 1 : vector<16x128xf32>, vector<16x128xf32> -> vector<16x256xf32>
    %105 = arith.mulf %9, %97 : vector<16x256xf32>
    %106 = arith.addf %105, %104 : vector<16x256xf32>
    %c0_19 = arith.constant 0 : index
    %c0_20 = arith.constant 0 : index
    %107 = vector.load %arg5[%c0_19, %c0_20] : memref<16x256xf32, #tpu.memory_space<vmem>>, vector<16x256xf32>
    tpu.vector_store %arg5[%c0_19, %c0_20], %106 {strides = array<i32>} : memref<16x256xf32, #tpu.memory_space<vmem>>, vector<16x256xf32>,
    return
  }
  func.func @transform_0(%arg0: i32, %arg1: memref<16xi32, #tpu.memory_space<smem>>) -> (i32, i32) {
    %c0_i32 = arith.constant 0 : i32
    %c0_i32_0 = arith.constant 0 : i32
    return %arg0, %c0_i32 : i32, i32
  }
  func.func @transform_1(%arg0: i32, %arg1: memref<16xi32, #tpu.memory_space<smem>>) -> (i32, i32) {
    %c0_i32 = arith.constant 0 : i32
    %c0_i32_0 = arith.constant 0 : i32
    %c0_i32_1 = arith.constant 0 : i32
    return %c0_i32, %c0_i32_0 : i32, i32
  }
  func.func @transform_2(%arg0: i32, %arg1: memref<16xi32, #tpu.memory_space<smem>>) -> (i32, i32) {
    %c0_i32 = arith.constant 0 : i32
    %c0_i32_0 = arith.constant 0 : i32
    %c0_i32_1 = arith.constant 0 : i32
    return %c0_i32, %c0_i32_0 : i32, i32
  }
  func.func @transform_3(%arg0: i32, %arg1: memref<16xi32, #tpu.memory_space<smem>>) -> (i32, i32) {
    %c0_i32 = arith.constant 0 : i32
    %c0_i32_0 = arith.constant 0 : i32
    return %arg0, %c0_i32 : i32, i32
  }
}

</mosaic_0001>

<bundles_post_ra>
// kernel: tpu_custom_call.1
= control target key start
LH: loop header
LB: loop body
LE: loop exit
PB: predicated region body
PF: predicated region fallthrough
CT: control target
= control target key end

     0   :  { %s404_s18 = smov [#allocation3]   ;;  %s569_s0 = inlined_call_operand.vmem [shape: s32[16], index: 0, kind: input, shape index: {}]   ;;  %s570_s1 = inlined_call_operand.vmem [shape: s32[16,1], index: 1, kind: input, shape index: {}]   ;;  %s571_s2 = inlined_call_operand.vmem [shape: s8[32,256], index: 2, kind: input, shape index: {}]   ;;  %s572_s3 = inlined_call_operand.vmem [shape: f32[32,4], index: 3, kind: input, shape index: {}]   ;;  %s573_s4 = inlined_call_operand.hbm [shape: f32[16,256], index: 4, kind: output, shape index: {}]  }
   0x1   :  { %s10_s17 = sshll.u32 %s569_s0, 4  ;;  %s11_s17 = int_to_ptr.vmem [resolvable:$true] %s10_s17 }
   0x2   :  { %13 = dma.vmem_to_smem %s11_s17, 16, %s404_s18, [#allocation2] }
   0x3   :  { %400 = dma.done.wait [#allocation2], 16 }
   0x4   :  { %401 = vsyncadd [#allocation2], 4294967280 }
   0x5   :  { %16 = sfence }
   0x6   :  { %v26_v0 = vld [vmem:[%s570_s1 + $0x8] sm:$0xff]  ;;  %s444_s21 = sld [smem:[#allocation3]]  ;;  %v405_v1 = vmov 0   ;;  %v453_v2 = vld [vmem:[%s571_s2] sm:$0xff] }
   0x7   :  { %356 = vset.pattern.permute.xlu0 %v405_v1  ;;  %357 = vset.pattern.permute.xlu1 %v405_v1  ;;  %s446_s22 = sld [smem:[#allocation3 + $0x1]]  ;;  %v458_v3 = vld [vmem:[%s571_s2 + $0x8] sm:$0xff]  ;;  %v49_v4 = vunpack.c.3.s8 %v453_v2  ;;  %v47_v6 = vunpack.c.2.s8 %v453_v2 }
   0x8   :  { %33 = vperm.xlu0 %356, %v26_v0   ;;  %s448_s23 = sld [smem:[#allocation3 + $0x2]]  ;;  %v50_v5 = vunpack.c.3.s8 %v458_v3  ;;  %v48_v7 = vunpack.c.2.s8 %v458_v3 }
   0x9   :  { %s460_s27 = sld [smem:[#allocation3 + $0x3]] }
   0xa   :  { %17 = vsyncpa [#allocation5], 0  ;;  %s466_s28 = sld [smem:[#allocation3 + $0x4]]  ;;  %v45_v8 = vunpack.c.1.s8 %v453_v2  ;;  %v46_v9 = vunpack.c.1.s8 %v458_v3  ;;  %v57_v10 = vcvt.s32.f32 %v49_v4  ;;  %v58_v11 = vcvt.s32.f32 %v50_v5  ;;  %v25_v14 = vld [vmem:[%s570_s1] sm:$0xff]  ;;  %s290_s8 = sshll.u32 %s573_s4, 4  ;;  %s291_s8 = int_to_ptr.hbm [resolvable:$true] %s290_s8 }
   0xb   :  { %s470_s2 = sld [smem:[#allocation3 + $0x5]]  ;;  %v55_v12 = vcvt.s32.f32 %v47_v6  ;;  %v56_v13 = vcvt.s32.f32 %v48_v7  ;;  %vm217_vm0 = vcmask 1040384   ;;  %vm219_vm1 = vcmask 1041408   ;;  %s411_s9 = smov 256  }
   0xc   :  { %s113_s5 = scalar_lea.vmem %s572_s3, %s444_s21  ;;  %s476_s6 = sld [smem:[#allocation3 + $0x6]]  ;;  %339 = vmatpush.msra.mxu2 %v57_v10  ;;  %343 = vmatpush.msra.mxu3 %v58_v11  ;;  %v53_v15 = vcvt.s32.f32 %v45_v8  ;;  %v54_v16 = vcvt.s32.f32 %v46_v9  ;;  %vm221_vm2 = vcmask 1042432   ;;  %vm223_vm3 = vcmask 1043456  }
   0xd   :  { %s117_s11 = scalar_lea.vmem %s572_s3, %s446_s22  ;;  %s485_s12 = sld [smem:[#allocation3 + $0x7]]  ;;  %v114_v17 = vld [vmem:[%s113_s5] sm:$0x1]  ;;  %78 = vmatpush.msra.mxu0 %v57_v10  ;;  %101 = vmatpush.msra.mxu1 %v58_v11  ;;  %vm225_vm4 = vcmask 1044480   ;;  %vm227_vm5 = vcmask 1045504   ;;  %vm229_vm6 = vcmask 1046528   ;;  %v43_v61 = vunpack.c.0.s8 %v453_v2 }
   0xe   :  { %v118_v18 = vld [vmem:[%s117_s11] sm:$0x1]  ;;  %s121_s15 = scalar_lea.vmem %s572_s3, %s448_s23  ;;  %s491_s16 = sld [smem:[#allocation3 + $0x8]]  ;;  %340 = vmatpush.msra.mxu2 %v55_v12  ;;  %344 = vmatpush.msra.mxu3 %v56_v13  ;;  %v44_v62 = vunpack.c.0.s8 %v458_v3  ;;  %v406_v1 = vmov 2   ;;  %v407_v4 = vmov 1   ;;  %v408_v5 = vmov 3  }
   0xf   :  { %v122_v19 = vld [vmem:[%s121_s15] sm:$0x1]  ;;  %s125_s18 = scalar_lea.vmem %s572_s3, %s460_s27  ;;  %v176_v20 = vrot.slane %v118_v18, 7  ;;  %s497_s19 = sld [smem:[#allocation3 + $0x9]]  ;;  %79 = vmatpush.msra.mxu0 %v55_v12  ;;  %102 = vmatpush.msra.mxu1 %v56_v13  ;;  %v51_v63 = vcvt.s32.f32 %v43_v61  ;;  %v27_v2 = vlaneseq  ;;  %vm59_vm7 = vcmask 261120  }
  0x10   :  { %30 = vperm.xlu0 %356, %v25_v14   ;;  %v126_v21 = vld [vmem:[%s125_s18] sm:$0x1]  ;;  %s129_s22 = scalar_lea.vmem %s572_s3, %s466_s28  ;;  %v179_v22 = vrot.slane %v122_v19, 6  ;;  %s503_s23 = sld [smem:[#allocation3 + $0xa]]  ;;  %341 = vmatpush.msra.mxu2 %v53_v15  ;;  %v52_v0 = vcvt.s32.f32 %v44_v62  ;;  %v409_v7 = vmov 0.0  }
  0x11   :  { %v130_v23 = vld [vmem:[%s129_s22] sm:$0x1]  ;;  %s133_s25 = scalar_lea.vmem %s572_s3, %s470_s2  ;;  %v182_v24 = vrot.slane %v126_v21, 5  ;;  %v218_v25 = vsel %vm217_vm0, %v114_v17, %v176_v20  ;;  %s510_s26 = sld [smem:[#allocation3 + $0xb]]  ;;  %345 = vmatpush.msra.mxu3 %v54_v16  ;;  %80 = vmatpush.msra.mxu0 %v53_v15  ;;  %v28_v3 = vand.u32 127, %v27_v2 }
  0x12   :  { %v134_v26 = vld [vmem:[%s133_s25] sm:$0x1]  ;;  %s137_s29 = scalar_lea.vmem %s572_s3, %s476_s6  ;;  %v185_v27 = vrot.slane %v130_v23, 4  ;;  %v220_v28 = vsel %vm219_vm1, %v218_v25, %v179_v22  ;;  %s517_s2 = sld [smem:[#allocation3 + $0xc]]  ;;  %103 = vmatpush.msra.mxu1 %v54_v16  ;;  %342 = vmatpush.msra.mxu2 %v51_v63 }
  0x13   :  { %v138_v29 = vld [vmem:[%s137_s29] sm:$0x1]  ;;  %s141_s7 = scalar_lea.vmem %s572_s3, %s485_s12  ;;  %v188_v30 = vrot.slane %v134_v26, 3  ;;  %v222_v31 = vsel %vm221_vm2, %v220_v28, %v182_v24  ;;  %s336_s6 = sld [smem:[#allocation3 + $0xd]]  ;;  %346 = vmatpush.msra.mxu3 %v52_v0  ;;  %81 = vmatpush.msra.mxu0 %v51_v63 }
  0x14   :  { %v142_v32 = vld [vmem:[%s141_s7] sm:$0x1]  ;;  %v191_v33 = vrot.slane %v138_v29, 2  ;;  %v224_v34 = vsel %vm223_vm3, %v222_v31, %v185_v27  ;;  %s145_s10 = scalar_lea.vmem %s572_s3, %s491_s16  ;;  %s337_s11 = sld [smem:[#allocation3 + $0xe]]  ;;  %104 = vmatpush.msra.mxu1 %v52_v0  ;;  %358 = vset.pattern.permute.xlu2 %v407_v4 }
  0x15   :  { %v194_v35 = vrot.slane %v142_v32, 1  ;;  %v226_v36 = vsel %vm225_vm4, %v224_v34, %v188_v30  ;;  %s149_s14 = scalar_lea.vmem %s572_s3, %s497_s19  ;;  %s338_s15 = sld [smem:[#allocation3 + $0xf]]  ;;  %v146_v38 = vld [vmem:[%s145_s10] sm:$0x1] }
  0x16   :  { %v228_v37 = vsel %vm227_vm5, %v226_v36, %v191_v33  ;;  %v150_v39 = vld [vmem:[%s149_s14] sm:$0x1]  ;;  %s153_s18 = scalar_lea.vmem %s572_s3, %s503_s23  ;;  %s412_s10 = smov 16  }
  0x17   :  { %v230_v40 = vsel %vm229_vm6, %v228_v37, %v194_v35  ;;  %v154_v41 = vld [vmem:[%s153_s18] sm:$0x1]  ;;  %s157_s21 = scalar_lea.vmem %s572_s3, %s510_s26  ;;  %v197_v42 = vrot.slane %v150_v39, 7 }
  0x18   :  { %240 = vperm.xlu1 %357, %v230_v40   ;;  %v158_v43 = vld [vmem:[%s157_s21] sm:$0x1]  ;;  %s161_s0 = scalar_lea.vmem %s572_s3, %s517_s2  ;;  %v200_v44 = vrot.slane %v154_v41, 6  ;;  %249 = vperm.xlu2 %358, %v230_v40  }
  0x19   :  { %v162_v45 = vld [vmem:[%s161_s0] sm:$0x1]  ;;  %s165_s23 = scalar_lea.vmem %s572_s3, %s336_s6  ;;  %v203_v46 = vrot.slane %v158_v43, 5  ;;  %v231_v47 = vsel %vm217_vm0, %v146_v38, %v197_v42  ;;  %359 = vset.pattern.permute.xlu0 %v406_v1 }
  0x1a   :  { %v166_v48 = vld [vmem:[%s165_s23] sm:$0x1]  ;;  %s169_s26 = scalar_lea.vmem %s572_s3, %s337_s11  ;;  %v206_v49 = vrot.slane %v162_v45, 4  ;;  %v232_v50 = vsel %vm219_vm1, %v231_v47, %v200_v44  ;;  %257 = vperm.xlu0 %359, %v230_v40  }
  0x1b   :  { %v170_v51 = vld [vmem:[%s169_s26] sm:$0x1]  ;;  %s173_s30 = scalar_lea.vmem %s572_s3, %s338_s15  ;;  %v209_v52 = vrot.slane %v166_v48, 3  ;;  %v233_v53 = vsel %vm221_vm2, %v232_v50, %v203_v46  ;;  %s410_s3 = smov [#allocation4]  }
  0x1c   :  { %v174_v54 = vld [vmem:[%s173_s30] sm:$0x1]  ;;  %v212_v55 = vrot.slane %v170_v51, 2  ;;  %v234_v56 = vsel %vm223_vm3, %v233_v53, %v206_v49  ;;  %s288_s5 = sshll.u32 %s410_s3, 4  ;;  %s289_s5 = int_to_ptr.vmem [resolvable:$true] %s288_s5 }
  0x1d   :  { %v215_v57 = vrot.slane %v174_v54, 1  ;;  %v235_v58 = vsel %vm225_vm4, %v234_v56, %v209_v52 }
  0x1e   :  { %v236_v59 = vsel %vm227_vm5, %v235_v58, %v212_v55 }
  0x1f   :  { %v237_v60 = vsel %vm229_vm6, %v236_v59, %v215_v57 }
  0x20   :  { %245 = vperm.xlu1 %357, %v237_v60   ;;  %253 = vperm.xlu2 %358, %v237_v60  }
  0x22   :  { %363 = vset.pattern.permute.xlu0 %v408_v5 }
  0x28   :  { %360 = vset.pattern.permute.xlu1 %v406_v1  ;;  %361 = vset.pattern.permute.xlu2 %v408_v5 }
  0x29   :  { %261 = vperm.xlu1 %360, %v237_v60   ;;  %265 = vperm.xlu2 %361, %v230_v40  }
  0x31   :  { %362 = vset.pattern.permute.xlu1 %v408_v5 }
  0x32   :  { %269 = vperm.xlu1 %362, %v237_v60  }
  0x72   :  { %v250_v13 = vpop.permute.xlu2 %249 }
  0x7a   :  { %v34_v6 = vpop.permute.xlu0 %33  ;;  %v254_v15 = vpop.permute.xlu2 %253 }
  0x7b   :  { %vm36_vm8 = vcmp.eq.s32.totalorder %v34_v6, %v28_v3 }
  0x7c   :  { %v319_v8 = vsel %vm36_vm8, 1.0, %v409_v7 }
  0x7d   :  { %321 = vmatmul.msk.f32.vlgmr.msra.gmra.mxu2 %vm59_vm7, %v319_v8  ;;  %323 = vmatmul.msk.f32.vlgmr.msra.gmra.mxu3 %vm59_vm7, %v319_v8 }
  0x82   :  { %v31_v9 = vpop.permute.xlu0 %30 }
  0x83   :  { %vm35_vm9 = vcmp.eq.s32.totalorder %v31_v9, %v28_v3  ;;  %v266_v21 = vpop.permute.xlu2 %265 }
  0x84   :  { %v318_v10 = vsel %vm35_vm9, 1.0, %v409_v7 }
  0x85   :  { %320 = vmatmul.msk.f32.vlgmr.msra.gmra.mxu0 %vm59_vm7, %v318_v10  ;;  %322 = vmatmul.msk.f32.vlgmr.msra.gmra.mxu1 %vm59_vm7, %v318_v10 }
  0x8a   :  { %v241_v11 = vpop.permute.xlu1 %240 }
  0x8c   :  { %v258_v22 = vpop.permute.xlu0 %257 }
  0x92   :  { %v246_v12 = vpop.permute.xlu1 %245 }
  0x9b   :  { %v262_v14 = vpop.permute.xlu1 %261 }
  0xa4   :  { %v270_v16 = vpop.permute.xlu1 %269 }
 0x100   :  { %v86_v17 = vpop.f32.mrf.mxu2  ;;  %v109_v18 = vpop.f32.mrf.mxu3 }
 0x101   :  { %v274_v19 = vmul.f32 %v246_v12, %v86_v17  ;;  %v275_v20 = vmul.f32 %v254_v15, %v109_v18 }
 0x102   :  { %v83_v23 = vpop.f32.mrf.mxu0  ;;  %v106_v24 = vpop.f32.mrf.mxu1 }
 0x103   :  { %v278_v25 = vadd.f32 %v274_v19, %v262_v14  ;;  %v279_v26 = vadd.f32 %v275_v20, %v270_v16  ;;  %v272_v27 = vmul.f32 %v241_v11, %v83_v23  ;;  %v273_v28 = vmul.f32 %v250_v13, %v106_v24 }
 0x105   :  { %282 = vst [vmem:[#allocation4 + $0x10] sm:$0xff] %v278_v25  ;;  %v277_v29 = vadd.f32 %v273_v28, %v266_v21  ;;  %v276_v30 = vadd.f32 %v272_v27, %v258_v22 }
 0x106   :  { %283 = vst [vmem:[#allocation4 + $0x18] sm:$0xff] %v279_v26 }
 0x107   :  { %281 = vst [vmem:[#allocation4 + $0x8] sm:$0xff] %v277_v29 }
 0x108   :  { %280 = vst [vmem:[#allocation4] sm:$0xff] %v276_v30 }
 0x109   :  { %296 = dma.vmem_to_hbm [thread:$0]  %s289_s5, 512, %s291_s8, [#allocation5], %s411_s9, %s411_s9, %s412_s10  }
 0x10a   :  { %402 = dma.done.wait [#allocation5], 512  }
 0x10b   :  { %403 = vsyncadd [#allocation5], 4294966784 }
 0x10c   :  { %301 = vsyncpa [#allocation5], 1 }

// kernel: tpu_custom_call.1
= control target key start
LH: loop header
LB: loop body
LE: loop exit
PB: predicated region body
PF: predicated region fallthrough
CT: control target
= control target key end

     0   :  { %s404_s18 = smov [#allocation3]   ;;  %s569_s0 = inlined_call_operand.vmem [shape: s32[16], index: 0, kind: input, shape index: {}]   ;;  %s570_s1 = inlined_call_operand.vmem [shape: s32[16,1], index: 1, kind: input, shape index: {}]   ;;  %s571_s2 = inlined_call_operand.vmem [shape: s8[32,256], index: 2, kind: input, shape index: {}]   ;;  %s572_s3 = inlined_call_operand.vmem [shape: f32[32,4], index: 3, kind: input, shape index: {}]   ;;  %s573_s4 = inlined_call_operand.hbm [shape: f32[16,256], index: 4, kind: output, shape index: {}]  }
   0x1   :  { %s10_s17 = sshll.u32 %s569_s0, 4  ;;  %s11_s17 = int_to_ptr.vmem [resolvable:$true] %s10_s17 }
   0x2   :  { %13 = dma.vmem_to_smem %s11_s17, 16, %s404_s18, [#allocation2] }
   0x3   :  { %400 = dma.done.wait [#allocation2], 16 }
   0x4   :  { %401 = vsyncadd [#allocation2], 4294967280 }
   0x5   :  { %16 = sfence }
   0x6   :  { %v26_v0 = vld [vmem:[%s570_s1 + $0x8] sm:$0xff]  ;;  %s444_s21 = sld [smem:[#allocation3]]  ;;  %v405_v1 = vmov 0   ;;  %v453_v2 = vld [vmem:[%s571_s2] sm:$0xff] }
   0x7   :  { %356 = vset.pattern.permute.xlu0 %v405_v1  ;;  %357 = vset.pattern.permute.xlu1 %v405_v1  ;;  %s446_s22 = sld [smem:[#allocation3 + $0x1]]  ;;  %v458_v3 = vld [vmem:[%s571_s2 + $0x8] sm:$0xff]  ;;  %v49_v4 = vunpack.c.3.s8 %v453_v2  ;;  %v47_v6 = vunpack.c.2.s8 %v453_v2 }
   0x8   :  { %33 = vperm.xlu0 %356, %v26_v0   ;;  %s448_s23 = sld [smem:[#allocation3 + $0x2]]  ;;  %v50_v5 = vunpack.c.3.s8 %v458_v3  ;;  %v48_v7 = vunpack.c.2.s8 %v458_v3 }
   0x9   :  { %s460_s27 = sld [smem:[#allocation3 + $0x3]] }
   0xa   :  { %17 = vsyncpa [#allocation5], 0  ;;  %s466_s28 = sld [smem:[#allocation3 + $0x4]]  ;;  %v45_v8 = vunpack.c.1.s8 %v453_v2  ;;  %v46_v9 = vunpack.c.1.s8 %v458_v3  ;;  %v57_v10 = vcvt.s32.f32 %v49_v4  ;;  %v58_v11 = vcvt.s32.f32 %v50_v5  ;;  %v25_v14 = vld [vmem:[%s570_s1] sm:$0xff]  ;;  %s290_s8 = sshll.u32 %s573_s4, 4  ;;  %s291_s8 = int_to_ptr.hbm [resolvable:$true] %s290_s8 }
   0xb   :  { %s470_s2 = sld [smem:[#allocation3 + $0x5]]  ;;  %v55_v12 = vcvt.s32.f32 %v47_v6  ;;  %v56_v13 = vcvt.s32.f32 %v48_v7  ;;  %vm217_vm0 = vcmask 1040384   ;;  %vm219_vm1 = vcmask 1041408   ;;  %s411_s9 = smov 256  }
   0xc   :  { %s113_s5 = scalar_lea.vmem %s572_s3, %s444_s21  ;;  %s476_s6 = sld [smem:[#allocation3 + $0x6]]  ;;  %339 = vmatpush.msra.mxu2 %v57_v10  ;;  %343 = vmatpush.msra.mxu3 %v58_v11  ;;  %v53_v15 = vcvt.s32.f32 %v45_v8  ;;  %v54_v16 = vcvt.s32.f32 %v46_v9  ;;  %vm221_vm2 = vcmask 1042432   ;;  %vm223_vm3 = vcmask 1043456  }
   0xd   :  { %s117_s11 = scalar_lea.vmem %s572_s3, %s446_s22  ;;  %s485_s12 = sld [smem:[#allocation3 + $0x7]]  ;;  %v114_v17 = vld [vmem:[%s113_s5] sm:$0x1]  ;;  %78 = vmatpush.msra.mxu0 %v57_v10  ;;  %101 = vmatpush.msra.mxu1 %v58_v11  ;;  %vm225_vm4 = vcmask 1044480   ;;  %vm227_vm5 = vcmask 1045504   ;;  %vm229_vm6 = vcmask 1046528   ;;  %v43_v61 = vunpack.c.0.s8 %v453_v2 }
   0xe   :  { %v118_v18 = vld [vmem:[%s117_s11] sm:$0x1]  ;;  %s121_s15 = scalar_lea.vmem %s572_s3, %s448_s23  ;;  %s491_s16 = sld [smem:[#allocation3 + $0x8]]  ;;  %340 = vmatpush.msra.mxu2 %v55_v12  ;;  %344 = vmatpush.msra.mxu3 %v56_v13  ;;  %v44_v62 = vunpack.c.0.s8 %v458_v3  ;;  %v406_v1 = vmov 2   ;;  %v407_v4 = vmov 1   ;;  %v408_v5 = vmov 3  }
   0xf   :  { %v122_v19 = vld [vmem:[%s121_s15] sm:$0x1]  ;;  %s125_s18 = scalar_lea.vmem %s572_s3, %s460_s27  ;;  %v176_v20 = vrot.slane %v118_v18, 7  ;;  %s497_s19 = sld [smem:[#allocation3 + $0x9]]  ;;  %79 = vmatpush.msra.mxu0 %v55_v12  ;;  %102 = vmatpush.msra.mxu1 %v56_v13  ;;  %v51_v63 = vcvt.s32.f32 %v43_v61  ;;  %v27_v2 = vlaneseq  ;;  %vm59_vm7 = vcmask 261120  }
  0x10   :  { %30 = vperm.xlu0 %356, %v25_v14   ;;  %v126_v21 = vld [vmem:[%s125_s18] sm:$0x1]  ;;  %s129_s22 = scalar_lea.vmem %s572_s3, %s466_s28  ;;  %v179_v22 = vrot.slane %v122_v19, 6  ;;  %s503_s23 = sld [smem:[#allocation3 + $0xa]]  ;;  %341 = vmatpush.msra.mxu2 %v53_v15  ;;  %v52_v0 = vcvt.s32.f32 %v44_v62  ;;  %v409_v7 = vmov 0.0  }
  0x11   :  { %v130_v23 = vld [vmem:[%s129_s22] sm:$0x1]  ;;  %s133_s25 = scalar_lea.vmem %s572_s3, %s470_s2  ;;  %v182_v24 = vrot.slane %v126_v21, 5  ;;  %v218_v25 = vsel %vm217_vm0, %v114_v17, %v176_v20  ;;  %s510_s26 = sld [smem:[#allocation3 + $0xb]]  ;;  %345 = vmatpush.msra.mxu3 %v54_v16  ;;  %80 = vmatpush.msra.mxu0 %v53_v15  ;;  %v28_v3 = vand.u32 127, %v27_v2 }
  0x12   :  { %v134_v26 = vld [vmem:[%s133_s25] sm:$0x1]  ;;  %s137_s29 = scalar_lea.vmem %s572_s3, %s476_s6  ;;  %v185_v27 = vrot.slane %v130_v23, 4  ;;  %v220_v28 = vsel %vm219_vm1, %v218_v25, %v179_v22  ;;  %s517_s2 = sld [smem:[#allocation3 + $0xc]]  ;;  %103 = vmatpush.msra.mxu1 %v54_v16  ;;  %342 = vmatpush.msra.mxu2 %v51_v63 }
  0x13   :  { %v138_v29 = vld [vmem:[%s137_s29] sm:$0x1]  ;;  %s141_s7 = scalar_lea.vmem %s572_s3, %s485_s12  ;;  %v188_v30 = vrot.slane %v134_v26, 3  ;;  %v222_v31 = vsel %vm221_vm2, %v220_v28, %v182_v24  ;;  %s336_s6 = sld [smem:[#allocation3 + $0xd]]  ;;  %346 = vmatpush.msra.mxu3 %v52_v0  ;;  %81 = vmatpush.msra.mxu0 %v51_v63 }
  0x14   :  { %v142_v32 = vld [vmem:[%s141_s7] sm:$0x1]  ;;  %v191_v33 = vrot.slane %v138_v29, 2  ;;  %v224_v34 = vsel %vm223_vm3, %v222_v31, %v185_v27  ;;  %s145_s10 = scalar_lea.vmem %s572_s3, %s491_s16  ;;  %s337_s11 = sld [smem:[#allocation3 + $0xe]]  ;;  %104 = vmatpush.msra.mxu1 %v52_v0  ;;  %358 = vset.pattern.permute.xlu2 %v407_v4 }
  0x15   :  { %v194_v35 = vrot.slane %v142_v32, 1  ;;  %v226_v36 = vsel %vm225_vm4, %v224_v34, %v188_v30  ;;  %s149_s14 = scalar_lea.vmem %s572_s3, %s497_s19  ;;  %s338_s15 = sld [smem:[#allocation3 + $0xf]]  ;;  %v146_v38 = vld [vmem:[%s145_s10] sm:$0x1] }
  0x16   :  { %v228_v37 = vsel %vm227_vm5, %v226_v36, %v191_v33  ;;  %v150_v39 = vld [vmem:[%s149_s14] sm:$0x1]  ;;  %s153_s18 = scalar_lea.vmem %s572_s3, %s503_s23  ;;  %s412_s10 = smov 16  }
  0x17   :  { %v230_v40 = vsel %vm229_vm6, %v228_v37, %v194_v35  ;;  %v154_v41 = vld [vmem:[%s153_s18] sm:$0x1]  ;;  %s157_s21 = scalar_lea.vmem %s572_s3, %s510_s26  ;;  %v197_v42 = vrot.slane %v150_v39, 7 }
  0x18   :  { %240 = vperm.xlu1 %357, %v230_v40   ;;  %v158_v43 = vld [vmem:[%s157_s21] sm:$0x1]  ;;  %s161_s0 = scalar_lea.vmem %s572_s3, %s517_s2  ;;  %v200_v44 = vrot.slane %v154_v41, 6  ;;  %249 = vperm.xlu2 %358, %v230_v40  }
  0x19   :  { %v162_v45 = vld [vmem:[%s161_s0] sm:$0x1]  ;;  %s165_s23 = scalar_lea.vmem %s572_s3, %s336_s6  ;;  %v203_v46 = vrot.slane %v158_v43, 5  ;;  %v231_v47 = vsel %vm217_vm0, %v146_v38, %v197_v42  ;;  %359 = vset.pattern.permute.xlu0 %v406_v1 }
  0x1a   :  { %v166_v48 = vld [vmem:[%s165_s23] sm:$0x1]  ;;  %s169_s26 = scalar_lea.vmem %s572_s3, %s337_s11  ;;  %v206_v49 = vrot.slane %v162_v45, 4  ;;  %v232_v50 = vsel %vm219_vm1, %v231_v47, %v200_v44  ;;  %257 = vperm.xlu0 %359, %v230_v40  }
  0x1b   :  { %v170_v51 = vld [vmem:[%s169_s26] sm:$0x1]  ;;  %s173_s30 = scalar_lea.vmem %s572_s3, %s338_s15  ;;  %v209_v52 = vrot.slane %v166_v48, 3  ;;  %v233_v53 = vsel %vm221_vm2, %v232_v50, %v203_v46  ;;  %s410_s3 = smov [#allocation4]  }
  0x1c   :  { %v174_v54 = vld [vmem:[%s173_s30] sm:$0x1]  ;;  %v212_v55 = vrot.slane %v170_v51, 2  ;;  %v234_v56 = vsel %vm223_vm3, %v233_v53, %v206_v49  ;;  %s288_s5 = sshll.u32 %s410_s3, 4  ;;  %s289_s5 = int_to_ptr.vmem [resolvable:$true] %s288_s5 }
  0x1d   :  { %v215_v57 = vrot.slane %v174_v54, 1  ;;  %v235_v58 = vsel %vm225_vm4, %v234_v56, %v209_v52 }
  0x1e   :  { %v236_v59 = vsel %vm227_vm5, %v235_v58, %v212_v55 }
  0x1f   :  { %v237_v60 = vsel %vm229_vm6, %v236_v59, %v215_v57 }
  0x20   :  { %245 = vperm.xlu1 %357, %v237_v60   ;;  %253 = vperm.xlu2 %358, %v237_v60  }
  0x22   :  { %363 = vset.pattern.permute.xlu0 %v408_v5 }
  0x28   :  { %360 = vset.pattern.permute.xlu1 %v406_v1  ;;  %361 = vset.pattern.permute.xlu2 %v408_v5 }
  0x29   :  { %261 = vperm.xlu1 %360, %v237_v60   ;;  %265 = vperm.xlu2 %361, %v230_v40  }
  0x31   :  { %362 = vset.pattern.permute.xlu1 %v408_v5 }
  0x32   :  { %269 = vperm.xlu1 %362, %v237_v60  }
  0x72   :  { %v250_v13 = vpop.permute.xlu2 %249 }
  0x7a   :  { %v34_v6 = vpop.permute.xlu0 %33  ;;  %v254_v15 = vpop.permute.xlu2 %253 }
  0x7b   :  { %vm36_vm8 = vcmp.eq.s32.totalorder %v34_v6, %v28_v3 }
  0x7c   :  { %v319_v8 = vsel %vm36_vm8, 1.0, %v409_v7 }
  0x7d   :  { %321 = vmatmul.msk.f32.vlgmr.msra.gmra.mxu2 %vm59_vm7, %v319_v8  ;;  %323 = vmatmul.msk.f32.vlgmr.msra.gmra.mxu3 %vm59_vm7, %v319_v8 }
  0x82   :  { %v31_v9 = vpop.permute.xlu0 %30 }
  0x83   :  { %vm35_vm9 = vcmp.eq.s32.totalorder %v31_v9, %v28_v3  ;;  %v266_v21 = vpop.permute.xlu2 %265 }
  0x84   :  { %v318_v10 = vsel %vm35_vm9, 1.0, %v409_v7 }
  0x85   :  { %320 = vmatmul.msk.f32.vlgmr.msra.gmra.mxu0 %vm59_vm7, %v318_v10  ;;  %322 = vmatmul.msk.f32.vlgmr.msra.gmra.mxu1 %vm59_vm7, %v318_v10 }
  0x8a   :  { %v241_v11 = vpop.permute.xlu1 %240 }
  0x8c   :  { %v258_v22 = vpop.permute.xlu0 %257 }
  0x92   :  { %v246_v12 = vpop.permute.xlu1 %245 }
  0x9b   :  { %v262_v14 = vpop.permute.xlu1 %261 }
  0xa4   :  { %v270_v16 = vpop.permute.xlu1 %269 }
 0x100   :  { %v86_v17 = vpop.f32.mrf.mxu2  ;;  %v109_v18 = vpop.f32.mrf.mxu3 }
 0x101   :  { %v274_v19 = vmul.f32 %v246_v12, %v86_v17  ;;  %v275_v20 = vmul.f32 %v254_v15, %v109_v18 }
 0x102   :  { %v83_v23 = vpop.f32.mrf.mxu0  ;;  %v106_v24 = vpop.f32.mrf.mxu1 }
 0x103   :  { %v278_v25 = vadd.f32 %v274_v19, %v262_v14  ;;  %v279_v26 = vadd.f32 %v275_v20, %v270_v16  ;;  %v272_v27 = vmul.f32 %v241_v11, %v83_v23  ;;  %v273_v28 = vmul.f32 %v250_v13, %v106_v24 }
 0x105   :  { %282 = vst [vmem:[#allocation4 + $0x10] sm:$0xff] %v278_v25  ;;  %v277_v29 = vadd.f32 %v273_v28, %v266_v21  ;;  %v276_v30 = vadd.f32 %v272_v27, %v258_v22 }
 0x106   :  { %283 = vst [vmem:[#allocation4 + $0x18] sm:$0xff] %v279_v26 }
 0x107   :  { %281 = vst [vmem:[#allocation4 + $0x8] sm:$0xff] %v277_v29 }
 0x108   :  { %280 = vst [vmem:[#allocation4] sm:$0xff] %v276_v30 }
 0x109   :  { %296 = dma.vmem_to_hbm [thread:$0]  %s289_s5, 512, %s291_s8, [#allocation5], %s411_s9, %s411_s9, %s412_s10  }
 0x10a   :  { %402 = dma.done.wait [#allocation5], 512  }
 0x10b   :  { %403 = vsyncadd [#allocation5], 4294966784 }
 0x10c   :  { %301 = vsyncpa [#allocation5], 1 }

</bundles_post_ra>
